<compile_context>
chip_gen: v5e
topology: v5e:2x2
jax: 0.10.0
libtpu: 0.0.40
codegen_flags: <defaults>
</compile_context>

<pallas_src>
import functools

import jax
import jax.numpy as jnp
from jax.experimental import pallas as pl
from jax.experimental.pallas import tpu as pltpu

BN_EPS = 1e-5
LANE = 128
SUBLANE = 8


def _shift_lanes(x, off):
    """y[:, p] = x[:, (p + off) % P]  (lane-axis rotate, static offset).

    Wraparound / cross-sample bleed only lands on halo or tail lanes, which are
    masked out downstream, so a cyclic shift realizes the 3x3 tap offsets
    exactly on interior pixels.  (pltpu.roll is the XLU-slot alternative.)
    """
    size = x.shape[1]
    s = (-off) % size
    if s == 0:
        return x
    return jnp.concatenate([x[:, size - s:], x[:, :size - s]], axis=1)


def _conv3x3(act, w_ref, wp):
    """3x3 conv as a single bf16 MXU matmul with contraction depth 9*C_pad.

    act:   (C_pad, P) f32, spatially zero-padded + flattened on the lane axis.
    w_ref: (C_pad, 9*C_pad) bf16, tap-major / channel-minor columns.
    """
    taps = []
    for kh in range(3):
        for kw in range(3):
            taps.append(_shift_lanes(act, (kh - 1) * wp + (kw - 1)))
    patches = jnp.concatenate(taps, axis=0).astype(jnp.bfloat16)   # (9*C_pad, P)
    return jnp.dot(w_ref[...], patches,
                   preferred_element_type=jnp.float32)             # (C_pad, P) f32


def _bn_fused(y, mask, gamma, beta, inv_count):
    """Training-mode BatchNorm with statistics fused into one masked pass."""
    ym = y * mask
    s = jnp.sum(ym, axis=1, keepdims=True)          # (C_pad, 1)
    ss = jnp.sum(ym * ym, axis=1, keepdims=True)    # (C_pad, 1)
    mean = s * inv_count
    var = ss * inv_count - mean * mean
    scale = jax.lax.rsqrt(var + BN_EPS) * gamma
    return (y - mean) * scale + beta


def basic_block_kernel(x_ref, mask_ref, w1_ref, w2_ref,
                       g1_ref, b1_ref, g2_ref, b2_ref, o_ref,
                       *, wp, inv_count):
    x = x_ref[...]          # (C_pad, P) f32; halo / tail lanes are already zero
    mask = mask_ref[...]    # (1, P) f32; 1.0 on interior pixels

    # conv1 -> bn1 -> relu, then re-zero the halo so conv2 sees zero padding
    y = _conv3x3(x, w1_ref, wp)
    y = _bn_fused(y, mask, g1_ref[...], b1_ref[...], inv_count)
    a = jnp.maximum(y, 0.0) * mask

    # conv2 -> bn2 -> residual add -> relu
    z = _conv3x3(a, w2_ref, wp)
    z = _bn_fused(z, mask, g2_ref[...], b2_ref[...], inv_count)
    o_ref[...] = jnp.maximum(z + x, 0.0)   # halo/tail lanes hold junk; host drops them


def basic_block(x_nchw, w1, w2, g1, b1, g2, b2):
    """Fused BasicBlock forward.

    x_nchw: (N, C, H, W) f32.  w1/w2: (3, 3, C, C) HWIO.  g*/b*: (C,).
    Supports the module as written: inplanes == planes, stride == 1.
    """
    N, C, H, W = x_nchw.shape
    assert w1.shape == (3, 3, C, C) and w2.shape == (3, 3, C, C), \
        "BasicBlock residual path requires inplanes == planes, stride == 1"

    Hp, Wp = H + 2, W + 2
    P = N * Hp * Wp
    PP = -(-P // LANE) * LANE                          # lane-dense flattened axis
    CP = max(SUBLANE, -(-C // SUBLANE) * SUBLANE)      # channels padded to sublanes

    # activations: NCHW -> (C_pad, N, Hp, Wp) -> (C_pad, PP)
    x_c = jnp.transpose(x_nchw.astype(jnp.float32), (1, 0, 2, 3))
    x_c = jnp.pad(x_c, ((0, CP - C), (0, 0), (1, 1), (1, 1)))
    x_flat = jnp.pad(x_c.reshape(CP, P), ((0, 0), (0, PP - P)))

    # interior-pixel mask on the same flattened axis
    m = jnp.zeros((1, N, Hp, Wp), jnp.float32).at[:, :, 1:H + 1, 1:W + 1].set(1.0)
    mask = jnp.pad(m.reshape(1, P), ((0, 0), (0, PP - P)))

    # weights: HWIO -> (C_pad, 9*C_pad), tap-major columns, bf16 MXU operands
    def pack_w(w):
        w_p = jnp.zeros((3, 3, CP, CP), jnp.float32).at[:, :, :C, :C].set(w)
        return jnp.transpose(w_p, (3, 0, 1, 2)).reshape(CP, 9 * CP).astype(jnp.bfloat16)

    def pack_bn(v):
        return jnp.zeros((CP, 1), jnp.float32).at[:C, 0].set(v.astype(jnp.float32))

    flops = 4 * 9 * N * H * W * C * C                   # two 3x3 convs, 2 flops/MAC
    bytes_accessed = (4 * (x_flat.size + mask.size + CP * PP)
                      + 2 * (2 * CP * 9 * CP) + 4 * 4 * CP)

    vmem = pl.BlockSpec(memory_space=pltpu.MemorySpace.VMEM)
    # TODO(synk): for ResNet-scale shapes, add a batch/spatial grid with 1-pixel
    # halo tiles and TWO-PASS BatchNorm statistics (per-tile partial sums, then
    # normalize) so BlockSpec double-buffering overlaps HBM traffic and the
    # working set fits v7x's 64 MiB VMEM; exact batch stats forbid single-pass
    # per-tile normalization, so this toy shape runs as one resident block.
    out_flat = pl.pallas_call(
        functools.partial(basic_block_kernel, wp=Wp,
                          inv_count=1.0 / float(N * H * W)),
        out_shape=jax.ShapeDtypeStruct((CP, PP), jnp.float32),
        in_specs=[vmem] * 8,
        out_specs=vmem,
        cost_estimate=pl.CostEstimate(flops=flops, transcendentals=2 * CP,
                                      bytes_accessed=bytes_accessed),
    )(x_flat, mask, pack_w(w1), pack_w(w2),
      pack_bn(g1), pack_bn(b1), pack_bn(g2), pack_bn(b2))

    # (C_pad, PP) -> crop real channels + interior pixels -> (N, C, H, W)
    out = out_flat[:C, :P].reshape(C, N, Hp, Wp)[:, :, 1:H + 1, 1:W + 1]
    return jnp.transpose(out, (1, 0, 2, 3))


def reference_basic_block(x_nchw, w1, w2, g1, b1, g2, b2,
                          conv_dtype=jnp.float32):
    """Pure-JAX reference; conv_dtype=bfloat16 mirrors the kernel's MXU operands."""
    def conv(x, w):
        return jax.lax.conv_general_dilated(
            x.astype(conv_dtype), w.astype(conv_dtype),
            window_strides=(1, 1), padding=((1, 1), (1, 1)),
            dimension_numbers=("NHWC", "HWIO", "NHWC"),
            preferred_element_type=jnp.float32)

    def bn(y, g, b):
        mu = jnp.mean(y, axis=(0, 1, 2), keepdims=True)
        var = jnp.mean((y - mu) ** 2, axis=(0, 1, 2), keepdims=True)
        return (y - mu) * jax.lax.rsqrt(var + BN_EPS) * g + b

    xh = jnp.transpose(x_nchw, (0, 2, 3, 1))
    y = jnp.maximum(bn(conv(xh, w1), g1, b1), 0.0)
    z = bn(conv(y, w2), g2, b2) + xh
    return jnp.transpose(jnp.maximum(z, 0.0), (0, 3, 1, 2))


if __name__ == "__main__":
    key = jax.random.PRNGKey(0)
    k_x, k_w1, k_w2 = jax.random.split(key, 3)

    N, C, H, W = 2, 4, 16, 16          # inplanes = planes = 4, stride = 1
    x = jax.random.normal(k_x, (N, C, H, W), jnp.float32)

    fan_in = 3 * 3 * C
    std = (2.0 / fan_in) ** 0.5
    w1 = jax.random.normal(k_w1, (3, 3, C, C), jnp.float32) * std
    w2 = jax.random.normal(k_w2, (3, 3, C, C), jnp.float32) * std

    g1 = jnp.ones((C,), jnp.float32)
    b1 = jnp.zeros((C,), jnp.float32)
    g2 = jnp.ones((C,), jnp.float32)
    b2 = jnp.zeros((C,), jnp.float32)

    out = jax.block_until_ready(basic_block(x, w1, w2, g1, b1, g2, b2))
    assert out.shape == (N, C, H, W)

    # exact-math check: reference with the same bf16 conv operands / f32 accumulation
    ref_bf16 = jax.block_until_ready(
        reference_basic_block(x, w1, w2, g1, b1, g2, b2, conv_dtype=jnp.bfloat16))
    assert jnp.allclose(out, ref_bf16, rtol=2e-2, atol=2e-2), \
        "mismatch vs bf16-operand reference"

    # semantics check: full-f32 PyTorch-style reference (bounds bf16 MXU drift)
    ref_f32 = jax.block_until_ready(
        reference_basic_block(x, w1, w2, g1, b1, g2, b2))
    assert jnp.allclose(out, ref_f32, rtol=1e-1, atol=2e-1), \
        "mismatch vs f32 reference"

    print("KERNEL_OK")
</pallas_src>

<mosaic_0001>
module attributes {stable_mosaic.version = 11 : i64} {
  func.func @basic_block_kernel(%arg0: memref<8x768xf32, #tpu.memory_space<vmem>>, %arg1: memref<1x768xf32, #tpu.memory_space<vmem>>, %arg2: memref<8x72xbf16, #tpu.memory_space<vmem>>, %arg3: memref<8x72xbf16, #tpu.memory_space<vmem>>, %arg4: memref<8x1xf32, #tpu.memory_space<vmem>>, %arg5: memref<8x1xf32, #tpu.memory_space<vmem>>, %arg6: memref<8x1xf32, #tpu.memory_space<vmem>>, %arg7: memref<8x1xf32, #tpu.memory_space<vmem>>, %arg8: memref<8x768xf32, #tpu.memory_space<vmem>>) attributes {dimension_semantics = [], scalar_prefetch = 0 : i64, scratch_operands = 0 : i64, tpu.core_type = #tpu.core_type<tc>} {
    %c0 = arith.constant 0 : index
    %c0_0 = arith.constant 0 : index
    %0 = vector.load %arg0[%c0, %c0_0] : memref<8x768xf32, #tpu.memory_space<vmem>>, vector<8x768xf32>
    %c0_1 = arith.constant 0 : index
    %c0_2 = arith.constant 0 : index
    %1 = vector.load %arg1[%c0_1, %c0_2] : memref<1x768xf32, #tpu.memory_space<vmem>>, vector<1x768xf32>
    %2 = vector.extract_strided_slice %0 {offsets = [0, 749], sizes = [8, 19], strides = [1, 1]} : vector<8x768xf32> to vector<8x19xf32>
    %3 = vector.extract_strided_slice %0 {offsets = [0, 0], sizes = [8, 749], strides = [1, 1]} : vector<8x768xf32> to vector<8x749xf32>
    %4 = tpu.concatenate %2, %3 in 1 : vector<8x19xf32>, vector<8x749xf32> -> vector<8x768xf32>
    %5 = vector.extract_strided_slice %0 {offsets = [0, 750], sizes = [8, 18], strides = [1, 1]} : vector<8x768xf32> to vector<8x18xf32>
    %6 = vector.extract_strided_slice %0 {offsets = [0, 0], sizes = [8, 750], strides = [1, 1]} : vector<8x768xf32> to vector<8x750xf32>
    %7 = tpu.concatenate %5, %6 in 1 : vector<8x18xf32>, vector<8x750xf32> -> vector<8x768xf32>
    %8 = vector.extract_strided_slice %0 {offsets = [0, 751], sizes = [8, 17], strides = [1, 1]} : vector<8x768xf32> to vector<8x17xf32>
    %9 = vector.extract_strided_slice %0 {offsets = [0, 0], sizes = [8, 751], strides = [1, 1]} : vector<8x768xf32> to vector<8x751xf32>
    %10 = tpu.concatenate %8, %9 in 1 : vector<8x17xf32>, vector<8x751xf32> -> vector<8x768xf32>
    %11 = vector.extract_strided_slice %0 {offsets = [0, 767], sizes = [8, 1], strides = [1, 1]} : vector<8x768xf32> to vector<8x1xf32>
    %12 = vector.extract_strided_slice %0 {offsets = [0, 0], sizes = [8, 767], strides = [1, 1]} : vector<8x768xf32> to vector<8x767xf32>
    %13 = tpu.concatenate %11, %12 in 1 : vector<8x1xf32>, vector<8x767xf32> -> vector<8x768xf32>
    %14 = vector.extract_strided_slice %0 {offsets = [0, 1], sizes = [8, 767], strides = [1, 1]} : vector<8x768xf32> to vector<8x767xf32>
    %15 = vector.extract_strided_slice %0 {offsets = [0, 0], sizes = [8, 1], strides = [1, 1]} : vector<8x768xf32> to vector<8x1xf32>
    %16 = tpu.concatenate %14, %15 in 1 : vector<8x767xf32>, vector<8x1xf32> -> vector<8x768xf32>
    %17 = vector.extract_strided_slice %0 {offsets = [0, 17], sizes = [8, 751], strides = [1, 1]} : vector<8x768xf32> to vector<8x751xf32>
    %18 = vector.extract_strided_slice %0 {offsets = [0, 0], sizes = [8, 17], strides = [1, 1]} : vector<8x768xf32> to vector<8x17xf32>
    %19 = tpu.concatenate %17, %18 in 1 : vector<8x751xf32>, vector<8x17xf32> -> vector<8x768xf32>
    %20 = vector.extract_strided_slice %0 {offsets = [0, 18], sizes = [8, 750], strides = [1, 1]} : vector<8x768xf32> to vector<8x750xf32>
    %21 = vector.extract_strided_slice %0 {offsets = [0, 0], sizes = [8, 18], strides = [1, 1]} : vector<8x768xf32> to vector<8x18xf32>
    %22 = tpu.concatenate %20, %21 in 1 : vector<8x750xf32>, vector<8x18xf32> -> vector<8x768xf32>
    %23 = vector.extract_strided_slice %0 {offsets = [0, 19], sizes = [8, 749], strides = [1, 1]} : vector<8x768xf32> to vector<8x749xf32>
    %24 = vector.extract_strided_slice %0 {offsets = [0, 0], sizes = [8, 19], strides = [1, 1]} : vector<8x768xf32> to vector<8x19xf32>
    %25 = tpu.concatenate %23, %24 in 1 : vector<8x749xf32>, vector<8x19xf32> -> vector<8x768xf32>
    %26 = tpu.concatenate %4, %7, %10, %13, %0, %16, %19, %22, %25 in 0 : vector<8x768xf32>, vector<8x768xf32>, vector<8x768xf32>, vector<8x768xf32>, vector<8x768xf32>, vector<8x768xf32>, vector<8x768xf32>, vector<8x768xf32>, vector<8x768xf32> -> vector<72x768xf32>
    %27 = arith.truncf %26 : vector<72x768xf32> to vector<72x768xbf16>
    %c0_3 = arith.constant 0 : index
    %c0_4 = arith.constant 0 : index
    %28 = vector.load %arg2[%c0_3, %c0_4] : memref<8x72xbf16, #tpu.memory_space<vmem>>, vector<8x72xbf16>
    %cst = arith.constant dense<0.000000e+00> : vector<8x768xf32>
    %29 = tpu.matmul %28, %27, %cst {dimension_numbers = #tpu.dot_dimension_numbers<[1], [0], [0], [1], [0, 0, 1, 1], [], []>} : vector<8x72xbf16>, vector<72x768xbf16>, vector<8x768xf32> -> vector<8x768xf32>
    %c0_5 = arith.constant 0 : index
    %c0_6 = arith.constant 0 : index
    %30 = vector.load %arg4[%c0_5, %c0_6] : memref<8x1xf32, #tpu.memory_space<vmem>>, vector<8x1xf32>
    %c0_7 = arith.constant 0 : index
    %c0_8 = arith.constant 0 : index
    %31 = vector.load %arg5[%c0_7, %c0_8] : memref<8x1xf32, #tpu.memory_space<vmem>>, vector<8x1xf32>
    %32 = vector.broadcast %1 : vector<1x768xf32> to vector<8x768xf32>
    %33 = arith.mulf %29, %32 : vector<8x768xf32>
    %cst_9 = arith.constant dense<0.000000e+00> : vector<8xf32>
    %34 = vector.multi_reduction <add>, %33, %cst_9 [1] : vector<8x768xf32> to vector<8xf32>
    %35 = vector.shape_cast %34 : vector<8xf32> to vector<8x1xf32>
    %36 = arith.mulf %33, %33 : vector<8x768xf32>
    %cst_10 = arith.constant dense<0.000000e+00> : vector<8xf32>
    %37 = vector.multi_reduction <add>, %36, %cst_10 [1] : vector<8x768xf32> to vector<8xf32>
    %38 = vector.shape_cast %37 : vector<8xf32> to vector<8x1xf32>
    %cst_11 = arith.constant 0.001953125 : f32
    %39 = vector.broadcast %cst_11 : f32 to vector<8x1xf32>
    %40 = arith.mulf %35, %39 : vector<8x1xf32>
    %cst_12 = arith.constant 0.001953125 : f32
    %41 = vector.broadcast %cst_12 : f32 to vector<8x1xf32>
    %42 = arith.mulf %38, %41 : vector<8x1xf32>
    %43 = arith.mulf %40, %40 : vector<8x1xf32>
    %44 = arith.subf %42, %43 : vector<8x1xf32>
    %cst_13 = arith.constant 9.99999974E-6 : f32
    %45 = vector.broadcast %cst_13 : f32 to vector<8x1xf32>
    %46 = arith.addf %44, %45 : vector<8x1xf32>
    %47 = math.rsqrt %46 : vector<8x1xf32>
    %48 = arith.mulf %47, %30 : vector<8x1xf32>
    %49 = vector.broadcast %40 : vector<8x1xf32> to vector<8x768xf32>
    %50 = arith.subf %29, %49 : vector<8x768xf32>
    %51 = vector.broadcast %48 : vector<8x1xf32> to vector<8x768xf32>
    %52 = arith.mulf %50, %51 : vector<8x768xf32>
    %53 = vector.broadcast %31 : vector<8x1xf32> to vector<8x768xf32>
    %54 = arith.addf %52, %53 : vector<8x768xf32>
    %cst_14 = arith.constant 0.000000e+00 : f32
    %55 = vector.broadcast %cst_14 : f32 to vector<8x768xf32>
    %56 = arith.maximumf %54, %55 : vector<8x768xf32>
    %57 = vector.broadcast %1 : vector<1x768xf32> to vector<8x768xf32>
    %58 = arith.mulf %56, %57 : vector<8x768xf32>
    %59 = vector.extract_strided_slice %58 {offsets = [0, 749], sizes = [8, 19], strides = [1, 1]} : vector<8x768xf32> to vector<8x19xf32>
    %60 = vector.extract_strided_slice %58 {offsets = [0, 0], sizes = [8, 749], strides = [1, 1]} : vector<8x768xf32> to vector<8x749xf32>
    %61 = tpu.concatenate %59, %60 in 1 : vector<8x19xf32>, vector<8x749xf32> -> vector<8x768xf32>
    %62 = vector.extract_strided_slice %58 {offsets = [0, 750], sizes = [8, 18], strides = [1, 1]} : vector<8x768xf32> to vector<8x18xf32>
    %63 = vector.extract_strided_slice %58 {offsets = [0, 0], sizes = [8, 750], strides = [1, 1]} : vector<8x768xf32> to vector<8x750xf32>
    %64 = tpu.concatenate %62, %63 in 1 : vector<8x18xf32>, vector<8x750xf32> -> vector<8x768xf32>
    %65 = vector.extract_strided_slice %58 {offsets = [0, 751], sizes = [8, 17], strides = [1, 1]} : vector<8x768xf32> to vector<8x17xf32>
    %66 = vector.extract_strided_slice %58 {offsets = [0, 0], sizes = [8, 751], strides = [1, 1]} : vector<8x768xf32> to vector<8x751xf32>
    %67 = tpu.concatenate %65, %66 in 1 : vector<8x17xf32>, vector<8x751xf32> -> vector<8x768xf32>
    %68 = vector.extract_strided_slice %58 {offsets = [0, 767], sizes = [8, 1], strides = [1, 1]} : vector<8x768xf32> to vector<8x1xf32>
    %69 = vector.extract_strided_slice %58 {offsets = [0, 0], sizes = [8, 767], strides = [1, 1]} : vector<8x768xf32> to vector<8x767xf32>
    %70 = tpu.concatenate %68, %69 in 1 : vector<8x1xf32>, vector<8x767xf32> -> vector<8x768xf32>
    %71 = vector.extract_strided_slice %58 {offsets = [0, 1], sizes = [8, 767], strides = [1, 1]} : vector<8x768xf32> to vector<8x767xf32>
    %72 = vector.extract_strided_slice %58 {offsets = [0, 0], sizes = [8, 1], strides = [1, 1]} : vector<8x768xf32> to vector<8x1xf32>
    %73 = tpu.concatenate %71, %72 in 1 : vector<8x767xf32>, vector<8x1xf32> -> vector<8x768xf32>
    %74 = vector.extract_strided_slice %58 {offsets = [0, 17], sizes = [8, 751], strides = [1, 1]} : vector<8x768xf32> to vector<8x751xf32>
    %75 = vector.extract_strided_slice %58 {offsets = [0, 0], sizes = [8, 17], strides = [1, 1]} : vector<8x768xf32> to vector<8x17xf32>
    %76 = tpu.concatenate %74, %75 in 1 : vector<8x751xf32>, vector<8x17xf32> -> vector<8x768xf32>
    %77 = vector.extract_strided_slice %58 {offsets = [0, 18], sizes = [8, 750], strides = [1, 1]} : vector<8x768xf32> to vector<8x750xf32>
    %78 = vector.extract_strided_slice %58 {offsets = [0, 0], sizes = [8, 18], strides = [1, 1]} : vector<8x768xf32> to vector<8x18xf32>
    %79 = tpu.concatenate %77, %78 in 1 : vector<8x750xf32>, vector<8x18xf32> -> vector<8x768xf32>
    %80 = vector.extract_strided_slice %58 {offsets = [0, 19], sizes = [8, 749], strides = [1, 1]} : vector<8x768xf32> to vector<8x749xf32>
    %81 = vector.extract_strided_slice %58 {offsets = [0, 0], sizes = [8, 19], strides = [1, 1]} : vector<8x768xf32> to vector<8x19xf32>
    %82 = tpu.concatenate %80, %81 in 1 : vector<8x749xf32>, vector<8x19xf32> -> vector<8x768xf32>
    %83 = tpu.concatenate %61, %64, %67, %70, %58, %73, %76, %79, %82 in 0 : vector<8x768xf32>, vector<8x768xf32>, vector<8x768xf32>, vector<8x768xf32>, vector<8x768xf32>, vector<8x768xf32>, vector<8x768xf32>, vector<8x768xf32>, vector<8x768xf32> -> vector<72x768xf32>
    %84 = arith.truncf %83 : vector<72x768xf32> to vector<72x768xbf16>
    %c0_15 = arith.constant 0 : index
    %c0_16 = arith.constant 0 : index
    %85 = vector.load %arg3[%c0_15, %c0_16] : memref<8x72xbf16, #tpu.memory_space<vmem>>, vector<8x72xbf16>
    %cst_17 = arith.constant dense<0.000000e+00> : vector<8x768xf32>
    %86 = tpu.matmul %85, %84, %cst_17 {dimension_numbers = #tpu.dot_dimension_numbers<[1], [0], [0], [1], [0, 0, 1, 1], [], []>} : vector<8x72xbf16>, vector<72x768xbf16>, vector<8x768xf32> -> vector<8x768xf32>
    %c0_18 = arith.constant 0 : index
    %c0_19 = arith.constant 0 : index
    %87 = vector.load %arg6[%c0_18, %c0_19] : memref<8x1xf32, #tpu.memory_space<vmem>>, vector<8x1xf32>
    %c0_20 = arith.constant 0 : index
    %c0_21 = arith.constant 0 : index
    %88 = vector.load %arg7[%c0_20, %c0_21] : memref<8x1xf32, #tpu.memory_space<vmem>>, vector<8x1xf32>
    %89 = vector.broadcast %1 : vector<1x768xf32> to vector<8x768xf32>
    %90 = arith.mulf %86, %89 : vector<8x768xf32>
    %cst_22 = arith.constant dense<0.000000e+00> : vector<8xf32>
    %91 = vector.multi_reduction <add>, %90, %cst_22 [1] : vector<8x768xf32> to vector<8xf32>
    %92 = vector.shape_cast %91 : vector<8xf32> to vector<8x1xf32>
    %93 = arith.mulf %90, %90 : vector<8x768xf32>
    %cst_23 = arith.constant dense<0.000000e+00> : vector<8xf32>
    %94 = vector.multi_reduction <add>, %93, %cst_23 [1] : vector<8x768xf32> to vector<8xf32>
    %95 = vector.shape_cast %94 : vector<8xf32> to vector<8x1xf32>
    %cst_24 = arith.constant 0.001953125 : f32
    %96 = vector.broadcast %cst_24 : f32 to vector<8x1xf32>
    %97 = arith.mulf %92, %96 : vector<8x1xf32>
    %cst_25 = arith.constant 0.001953125 : f32
    %98 = vector.broadcast %cst_25 : f32 to vector<8x1xf32>
    %99 = arith.mulf %95, %98 : vector<8x1xf32>
    %100 = arith.mulf %97, %97 : vector<8x1xf32>
    %101 = arith.subf %99, %100 : vector<8x1xf32>
    %cst_26 = arith.constant 9.99999974E-6 : f32
    %102 = vector.broadcast %cst_26 : f32 to vector<8x1xf32>
    %103 = arith.addf %101, %102 : vector<8x1xf32>
    %104 = math.rsqrt %103 : vector<8x1xf32>
    %105 = arith.mulf %104, %87 : vector<8x1xf32>
    %106 = vector.broadcast %97 : vector<8x1xf32> to vector<8x768xf32>
    %107 = arith.subf %86, %106 : vector<8x768xf32>
    %108 = vector.broadcast %105 : vector<8x1xf32> to vector<8x768xf32>
    %109 = arith.mulf %107, %108 : vector<8x768xf32>
    %110 = vector.broadcast %88 : vector<8x1xf32> to vector<8x768xf32>
    %111 = arith.addf %109, %110 : vector<8x768xf32>
    %112 = arith.addf %111, %0 : vector<8x768xf32>
    %cst_27 = arith.constant 0.000000e+00 : f32
    %113 = vector.broadcast %cst_27 : f32 to vector<8x768xf32>
    %114 = arith.maximumf %112, %113 : vector<8x768xf32>
    %c0_28 = arith.constant 0 : index
    %c0_29 = arith.constant 0 : index
    %115 = vector.load %arg8[%c0_28, %c0_29] : memref<8x768xf32, #tpu.memory_space<vmem>>, vector<8x768xf32>
    tpu.vector_store %arg8[%c0_28, %c0_29], %114 {strides = array<i32>} : memref<8x768xf32, #tpu.memory_space<vmem>>, vector<8x768xf32>,
    return
  }
}

</mosaic_0001>

<bundles_post_ra>
// kernel: tpu_custom_call.1
= control target key start
LH: loop header
LB: loop body
LE: loop exit
PB: predicated region body
PF: predicated region fallthrough
CT: control target
= control target key end

     0   :  { %13 = vsyncpa [#allocation3], 0  ;;  %s1882_s0 = inlined_call_operand.hbm [shape: f32[8,768], index: 0, kind: input, shape index: {}]   ;;  %s1883_s1 = inlined_call_operand.vmem [shape: f32[1,768], index: 1, kind: input, shape index: {}]   ;;  %s1884_s2 = inlined_call_operand.vmem [shape: bf16[8,72], index: 2, kind: input, shape index: {}]   ;;  %s1885_s3 = inlined_call_operand.vmem [shape: bf16[8,72], index: 3, kind: input, shape index: {}]   ;;  %s1886_s4 = inlined_call_operand.vmem [shape: f32[8,1], index: 4, kind: input, shape index: {}]   ;;  %s1887_s5 = inlined_call_operand.vmem [shape: f32[8,1], index: 5, kind: input, shape index: {}]   ;;  %s1888_s6 = inlined_call_operand.vmem [shape: f32[8,1], index: 6, kind: input, shape index: {}]   ;;  %s1889_s7 = inlined_call_operand.vmem [shape: f32[8,1], index: 7, kind: input, shape index: {}]   ;;  %s1890_s8 = inlined_call_operand.hbm [shape: f32[8,768], index: 8, kind: output, shape index: {}]  }
   0x1   :  { %14 = vsyncpa [#allocation4], 0  ;;  %s20_s29 = sshll.u32 %s1882_s0, 4  ;;  %s1235_s30 = smov [#allocation2]   ;;  %s21_s29 = int_to_ptr.hbm [resolvable:$true] %s20_s29 }
   0x2   :  { %s22_s9 = sshll.u32 %s1235_s30, 4  ;;  %s23_s9 = int_to_ptr.vmem [resolvable:$true] %s22_s9 }
   0x3   :  { %25 = dma.hbm_to_vmem [thread:$0]  %s21_s29, 768, %s23_s9, [#allocation3]  }
   0x4   :  { %1231 = dma.done.wait [#allocation3], 768  }
   0x5   :  { %1232 = vsyncadd [#allocation3], 4294966528  ;;  %v1294_v0 = vld [vmem:[#allocation2 + $0x10] sm:$0xff]  ;;  %v1296_v1 = vld [vmem:[#allocation2 + $0x18] sm:$0xff]  ;;  %s1236_s0 = smov 111   ;;  %s1237_s10 = smov 109  }
   0x6   :  { %v1298_v2 = vld [vmem:[#allocation2] sm:$0xff]  ;;  %v981_v3 = vpack.i.bf16 %v1296_v1, %v1294_v0  ;;  %v1302_v4 = vld [vmem:[#allocation2 + $0x8] sm:$0xff]  ;;  %s1238_s11 = smov 110   ;;  %s1239_s12 = smov 127   ;;  %vm252_vm0 = vcmask 891904   ;;  %vm301_vm1 = vcmask 1043456  }
   0x7   :  { %v971_v5 = vpack.i.bf16 %v1302_v4, %v1298_v2  ;;  %v1312_v6 = vld [vmem:[#allocation2 + $0x20] sm:$0xff]  ;;  %v1314_v7 = vld [vmem:[#allocation2 + $0x28] sm:$0xff]  ;;  %s1240_s13 = smov 1   ;;  %s1241_s14 = smov 17   ;;  %v1031_v10 = vpack.i.bf16 %v1294_v0, %v1302_v4  ;;  %vm200_vm2 = vcmask 908288   ;;  %vm226_vm3 = vcmask 900096  }
   0x8   :  { %982 = vrot.lane.b32.xlu2 %v981_v3, %s1236_s0  ;;  %v991_v8 = vpack.i.bf16 %v1314_v7, %v1312_v6  ;;  %v1011_v9 = vpack.i.bf16 %v1298_v2, %v1314_v7  ;;  %s1242_s15 = smov 18   ;;  %s1243_s16 = smov 19   ;;  %vm174_vm4 = vcmask 1039360   ;;  %vm123_vm5 = vcmask 138240  }
   0x9   :  { %972 = vrot.lane.b32.xlu1 %v971_v5, %s1236_s0  ;;  %962 = vrot.lane.b32.xlu0 %v971_v5, %s1237_s10  ;;  %vm149_vm6 = vcmask 7168   ;;  %vm71_vm7 = vcmask 154624   ;;  %vm97_vm8 = vcmask 146432   ;;  %vm297_vm9 = vcmask 588800   ;;  %s928_s28 = sshll.u32 %s1890_s8, 4  ;;  %s929_s28 = int_to_ptr.hbm [resolvable:$true] %s928_s28 }
  0x10   :  { %987 = vrot.lane.b32.xlu2 %v981_v3, %s1238_s11 }
  0x11   :  { %977 = vrot.lane.b32.xlu1 %v971_v5, %s1238_s11  ;;  %967 = vrot.lane.b32.xlu0 %v981_v3, %s1237_s10 }
  0x18   :  { %1002 = vrot.lane.b32.xlu2 %v981_v3, %s1239_s12 }
  0x19   :  { %997 = vrot.lane.b32.xlu1 %v971_v5, %s1239_s12  ;;  %992 = vrot.lane.b32.xlu0 %v991_v8, %s1237_s10 }
  0x20   :  { %1017 = vrot.lane.b32.xlu2 %v991_v8, %s1236_s0 }
  0x21   :  { %1012 = vrot.lane.b32.xlu1 %v1011_v9, %s1240_s13  ;;  %1007 = vrot.lane.b32.xlu0 %v1011_v9, %s1241_s14 }
  0x28   :  { %1032 = vrot.lane.b32.xlu2 %v1031_v10, %s1240_s13 }
  0x29   :  { %1027 = vrot.lane.b32.xlu1 %v1031_v10, %s1241_s14  ;;  %1022 = vrot.lane.b32.xlu0 %v991_v8, %s1238_s11 }
  0x30   :  { %170 = vrot.lane.b32.xlu2 %v1312_v6, %s1239_s12 }
  0x31   :  { %1042 = vrot.lane.b32.xlu1 %v1011_v9, %s1242_s15  ;;  %1037 = vrot.lane.b32.xlu0 %v1011_v9, %s1243_s16 }
  0x38   :  { %119 = vrot.lane.b32.xlu2 %v1296_v1, %s1241_s14 }
  0x39   :  { %1052 = vrot.lane.b32.xlu1 %v1031_v10, %s1242_s15  ;;  %1047 = vrot.lane.b32.xlu0 %v1031_v10, %s1243_s16 }
  0x40   :  { %93 = vrot.lane.b32.xlu2 %v1296_v1, %s1242_s15 }
  0x41   :  { %67 = vrot.lane.b32.xlu1 %v1296_v1, %s1243_s16  ;;  %145 = vrot.lane.b32.xlu0 %v1296_v1, %s1240_s13 }
  0x48   :  { %147 = vrot.lane.b32.xlu2 %v1312_v6, %s1240_s13 }
  0x49   :  { %121 = vrot.lane.b32.xlu1 %v1312_v6, %s1241_s14  ;;  %172 = vrot.lane.b32.xlu0 %v1314_v7, %s1239_s12 }
  0x51   :  { %95 = vrot.lane.b32.xlu1 %v1312_v6, %s1242_s15  ;;  %69 = vrot.lane.b32.xlu0 %v1312_v6, %s1243_s16 }
  0x62   :  { %v1355_v11 = vpop.permute.xlu2 %982 }
  0x63   :  { %v985_v23 = vunpack.i.h.bf16 %v1355_v11  ;;  %v984_v32 = vunpack.i.l.bf16 %v1355_v11 }
  0x65   :  { %v203_v41 = vsel %vm200_vm2, %v984_v32, %v985_v23 }
  0x6a   :  { %v1357_v12 = vpop.permute.xlu2 %987 }
  0x6b   :  { %v990_v24 = vunpack.i.h.bf16 %v1357_v12  ;;  %v989_v25 = vunpack.i.l.bf16 %v1357_v12 }
  0x6d   :  { %v229_v42 = vsel %vm226_vm3, %v989_v25, %v990_v24 }
  0x6e   :  { %v286_v51 = vpack.c.bf16 %v229_v42, %v203_v41 }
  0x72   :  { %v1368_v19 = vpop.permute.xlu2 %1002 }
  0x73   :  { %v1005_v37 = vunpack.i.h.bf16 %v1368_v19  ;;  %v1004_v43 = vunpack.i.l.bf16 %v1368_v19 }
  0x75   :  { %v177_v52 = vsel %vm174_vm4, %v1004_v43, %v1005_v37 }
  0x76   :  { %v280_v63 = vpack.c.bf16 %v177_v52, %v1294_v0 }
  0x7a   :  { %v1400_v47 = vpop.permute.xlu2 %1017 }
  0x7b   :  { %v1359_v13 = vpop.permute.xlu1 %972  ;;  %v1361_v14 = vpop.permute.xlu0 %962 }
  0x7c   :  { %v965_v15 = vunpack.i.h.bf16 %v1361_v14  ;;  %v964_v16 = vunpack.i.l.bf16 %v1361_v14  ;;  %v975_v21 = vunpack.i.h.bf16 %v1359_v13  ;;  %v974_v22 = vunpack.i.l.bf16 %v1359_v13 }
  0x7e   :  { %v253_v17 = vsel %vm252_vm0, %v964_v16, %v965_v15  ;;  %v201_v33 = vsel %vm200_vm2, %v974_v22, %v975_v21  ;;  %v202_v50 = vsel %vm200_vm2, %v975_v21, %v984_v32  ;;  %v1019_v21 = vunpack.i.l.bf16 %v1400_v47 }
  0x7f   :  { %v290_v18 = vpack.c.bf16 %v253_v17, %v253_v17 }
  0x81   :  { %v303_v20 = vsel %vm301_vm1, %v290_v18, 0 }
  0x82   :  { %323 = vmatpush.bf16.msra.mxu0 %v303_v20  ;;  %v1426_v9 = vpop.permute.xlu2 %1032 }
  0x83   :  { %v1376_v26 = vpop.permute.xlu1 %977  ;;  %v968_v27 = vpop.permute.xlu0 %967  ;;  %v1035_v20 = vunpack.i.h.bf16 %v1426_v9 }
  0x84   :  { %v980_v28 = vunpack.i.h.bf16 %v1376_v26  ;;  %v979_v29 = vunpack.i.l.bf16 %v1376_v26  ;;  %v970_v30 = vunpack.i.h.bf16 %v968_v27  ;;  %v969_v31 = vunpack.i.l.bf16 %v968_v27 }
  0x86   :  { %v227_v34 = vsel %vm226_vm3, %v979_v29, %v980_v28  ;;  %v254_v35 = vsel %vm252_vm0, %v965_v15, %v969_v31  ;;  %v255_v36 = vsel %vm252_vm0, %v969_v31, %v970_v30  ;;  %v228_v46 = vsel %vm226_vm3, %v980_v28, %v989_v25 }
  0x87   :  { %v284_v38 = vpack.c.bf16 %v227_v34, %v201_v33  ;;  %v291_v39 = vpack.c.bf16 %v254_v35, %v254_v35  ;;  %v292_v40 = vpack.c.bf16 %v255_v36, %v255_v36  ;;  %v285_v56 = vpack.c.bf16 %v228_v46, %v202_v50 }
  0x88   :  { %v1034_v25 = vunpack.i.l.bf16 %v1426_v9  ;;  %v204_v35 = vsel %vm200_vm2, %v985_v23, %v1019_v21 }
  0x89   :  { %324 = vmatpush.bf16.msra.mxu0 %v284_v38  ;;  %v306_v44 = vsel %vm301_vm1, %v291_v39, 0  ;;  %v309_v45 = vsel %vm301_vm1, %v292_v40, 0 }
  0x8a   :  { %336 = vmatpush.bf16.msra.mxu1 %v306_v44  ;;  %349 = vmatpush.bf16.msra.mxu2 %v309_v45  ;;  %v151_v33 = vsel %vm149_vm6, %v1034_v25, %v1035_v20  ;;  %v1455_v36 = vpop.permute.xlu2 %170 }
  0x8b   :  { %v1402_v48 = vpop.permute.xlu1 %997  ;;  %v1404_v49 = vpop.permute.xlu0 %992  ;;  %v178_v11 = vsel %vm174_vm4, %v1005_v37, %v1455_v36 }
  0x8c   :  { %v1000_v53 = vunpack.i.h.bf16 %v1402_v48  ;;  %v999_v54 = vunpack.i.l.bf16 %v1402_v48  ;;  %v994_v55 = vunpack.i.l.bf16 %v1404_v49  ;;  %v995_v34 = vunpack.i.h.bf16 %v1404_v49 }
  0x8e   :  { %337 = vmatpush.bf16.msra.mxu1 %v285_v56  ;;  %350 = vmatpush.bf16.msra.mxu2 %v286_v51  ;;  %v175_v57 = vsel %vm174_vm4, %v999_v54, %v1000_v53  ;;  %v176_v58 = vsel %vm174_vm4, %v1000_v53, %v1004_v43  ;;  %v256_v59 = vsel %vm252_vm0, %v970_v30, %v994_v55 }
  0x8f   :  { %v278_v60 = vpack.c.bf16 %v175_v57, %v1298_v2  ;;  %v279_v61 = vpack.c.bf16 %v176_v58, %v1302_v4  ;;  %v293_v62 = vpack.c.bf16 %v256_v59, %v256_v59  ;;  %v257_v23 = vsel %vm252_vm0, %v994_v55, %v995_v34  ;;  %v1492_v59 = vld [vmem:[%s1884_s2] sm:$0xf] }
  0x90   :  { %v294_v51 = vpack.c.bf16 %v257_v23, %v257_v23  ;;  %v1020_v55 = vunpack.i.h.bf16 %v1400_v47 }
  0x91   :  { %325 = vmatpush.bf16.msra.mxu0 %v278_v60  ;;  %v312_v3 = vsel %vm301_vm1, %v293_v62, 0 }
  0x92   :  { %338 = vmatpush.bf16.msra.mxu1 %v279_v61  ;;  %362 = vmatpush.bf16.msra.mxu3 %v312_v3  ;;  %v120_v56 = vpop.permute.xlu2 %119  ;;  %v315_v58 = vsel %vm301_vm1, %v294_v51, 0  ;;  %v205_v60 = vsel %vm200_vm2, %v1019_v21, %v1020_v55  ;;  %v265_v61 = vsel %vm252_vm0, %v995_v34, %v964_v16 }
  0x93   :  { %v1422_v5 = vpop.permute.xlu1 %1012  ;;  %v1424_v8 = vpop.permute.xlu0 %1007  ;;  %351 = vmatpush.bf16.msra.mxu2 %v280_v63 }
  0x94   :  { %v1015_v2 = vunpack.i.h.bf16 %v1422_v5  ;;  %v1014_v4 = vunpack.i.l.bf16 %v1422_v5  ;;  %v1010_v0 = vunpack.i.h.bf16 %v1424_v8  ;;  %v1009_v10 = vunpack.i.l.bf16 %v1424_v8 }
  0x96   :  { %v135_v15 = vsel %vm123_vm5, %v1009_v10, %v1010_v0  ;;  %v161_v17 = vsel %vm149_vm6, %v1014_v4, %v1015_v2  ;;  %v150_v39 = vsel %vm149_vm6, %v1015_v2, %v1034_v25 }
  0x97   :  { %v272_v18 = vpack.c.bf16 %v161_v17, %v135_v15  ;;  %v295_v17 = vpack.c.bf16 %v265_v61, %v265_v61 }
  0x99   :  { %326 = vmatpush.bf16.msra.mxu0 %v272_v18 }
  0x9b   :  { %v1441_v27 = vpop.permute.xlu1 %1027  ;;  %v1443_v28 = vpop.permute.xlu0 %1022 }
  0x9c   :  { %v1030_v30 = vunpack.i.h.bf16 %v1441_v27  ;;  %v1029_v31 = vunpack.i.l.bf16 %v1441_v27  ;;  %v1024_v32 = vunpack.i.l.bf16 %v1443_v28  ;;  %v1025_v45 = vunpack.i.h.bf16 %v1443_v28 }
  0x9e   :  { %v124_v38 = vsel %vm123_vm5, %v1010_v0, %v1029_v31  ;;  %v125_v40 = vsel %vm123_vm5, %v1029_v31, %v1030_v30  ;;  %v230_v41 = vsel %vm226_vm3, %v990_v24, %v1024_v32  ;;  %v281_v24 = vpack.c.bf16 %v178_v11, %v1296_v1 }
  0x9f   :  { %v273_v42 = vpack.c.bf16 %v150_v39, %v124_v38  ;;  %v274_v43 = vpack.c.bf16 %v151_v33, %v125_v40  ;;  %v287_v44 = vpack.c.bf16 %v230_v41, %v204_v35  ;;  %v231_v57 = vsel %vm226_vm3, %v1024_v32, %v1025_v45  ;;  %v94_v33 = vpop.permute.xlu2 %93 }
  0xa0   :  { %v288_v63 = vpack.c.bf16 %v231_v57, %v205_v60  ;;  %v318_v31 = vsel %vm301_vm1, %v295_v17, 0  ;;  %v239_v32 = vsel %vm226_vm3, %v1025_v45, %v979_v29  ;;  %v213_v38 = vsel %vm200_vm2, %v1020_v55, %v974_v22 }
  0xa1   :  { %339 = vmatpush.bf16.msra.mxu1 %v273_v42  ;;  %352 = vmatpush.bf16.msra.mxu2 %v274_v43  ;;  %v289_v26 = vpack.c.bf16 %v239_v32, %v213_v38  ;;  %v126_v29 = vsel %vm123_vm5, %v1030_v30, %v120_v56 }
  0xa2   :  { %363 = vmatpush.bf16.msra.mxu3 %v287_v44 }
  0xa3   :  { %v1471_v46 = vpop.permute.xlu1 %1042  ;;  %v1473_v12 = vpop.permute.xlu0 %1037 }
  0xa4   :  { %v1045_v49 = vunpack.i.h.bf16 %v1471_v46  ;;  %v1044_v19 = vunpack.i.l.bf16 %v1471_v46  ;;  %v1040_v37 = vunpack.i.h.bf16 %v1473_v12  ;;  %v1039_v50 = vunpack.i.l.bf16 %v1473_v12  ;;  %v51_v12 = vld [vmem:[%s1883_s1] sm:$0x3f] }
  0xa5   :  { %v1561_v51 = vperm.slane %v51_v12, 0  ;;  %v1571_v57 = vperm.slane %v51_v12, 3 }
  0xa6   :  { %364 = vmatpush.bf16.msra.mxu3 %v281_v24  ;;  %v83_v52 = vsel %vm71_vm7, %v1039_v50, %v1040_v37  ;;  %v109_v1 = vsel %vm97_vm8, %v1044_v19, %v1045_v49 }
  0xa7   :  { %v266_v53 = vpack.c.bf16 %v109_v1, %v83_v52  ;;  %v148_v43 = vpop.permute.xlu2 %147  ;;  %v1563_v52 = vperm.slane %v51_v12, 1 }
  0xa8   :  { %v154_v48 = vsel %vm149_vm6, %v148_v43, %v1014_v4 }
  0xa9   :  { %327 = vmatpush.bf16.msra.mxu0 %v266_v53 }
  0xab   :  { %v1053_v47 = vpop.permute.xlu1 %1052  ;;  %v1048_v62 = vpop.permute.xlu0 %1047 }
  0xac   :  { %v1055_v3 = vunpack.i.h.bf16 %v1053_v47  ;;  %v1054_v2 = vunpack.i.l.bf16 %v1053_v47  ;;  %v1050_v0 = vunpack.i.h.bf16 %v1048_v62  ;;  %v1049_v15 = vunpack.i.l.bf16 %v1048_v62  ;;  %938 = vmatmul.msk.bf16.vlgmr.msra.gmra.mxu0 %vm297_vm9, %v1492_v59 }
  0xad   :  { %375 = vmatpush.bf16.msrb.mxu0 %v315_v58 }
  0xae   :  { %v72_v18 = vsel %vm71_vm7, %v1040_v37, %v1049_v15  ;;  %v98_v21 = vsel %vm97_vm8, %v1045_v49, %v1054_v2  ;;  %v73_v14 = vsel %vm71_vm7, %v1049_v15, %v1050_v0  ;;  %v99_v16 = vsel %vm97_vm8, %v1054_v2, %v1055_v3 }
  0xaf   :  { %v267_v25 = vpack.c.bf16 %v98_v21, %v72_v18  ;;  %v268_v28 = vpack.c.bf16 %v99_v16, %v73_v14  ;;  %v100_v22 = vsel %vm97_vm8, %v1055_v3, %v94_v33  ;;  %v1581_v15 = vperm.slane %v51_v12, 5 }
  0xb1   :  { %376 = vmatpush.bf16.msrb.mxu0 %v288_v63  ;;  %340 = vmatpush.bf16.msra.mxu1 %v267_v25 }
  0xb2   :  { %353 = vmatpush.bf16.msra.mxu2 %v268_v28 }
  0xb3   :  { %v68_v34 = vpop.permute.xlu1 %67  ;;  %v146_v35 = vpop.permute.xlu0 %145 }
  0xb4   :  { %v152_v39 = vsel %vm149_vm6, %v1035_v20, %v146_v35  ;;  %939 = vmatmul.msk.bf16.vlgmr.msra.gmra.mxu1 %vm297_vm9, %v1492_v59  ;;  %v74_v13 = vsel %vm71_vm7, %v1050_v0, %v68_v34  ;;  %v1579_v0 = vperm.slane %v51_v12, 4 }
  0xb5   :  { %388 = vmatpush.bf16.msrb.mxu1 %v318_v31  ;;  %940 = vmatmul.msk.bf16.vlgmr.msra.gmra.mxu2 %vm297_vm9, %v1492_v59  ;;  %v275_v40 = vpack.c.bf16 %v152_v39, %v126_v29  ;;  %v269_v9 = vpack.c.bf16 %v100_v22, %v74_v13  ;;  %v1244_v22 = vmov 0  }
  0xb6   :  { %1056 = vset.pattern.permute.xlu1 %v1244_v22  ;;  %1172 = vset.pattern.permute.xlu0 %v1244_v22 }
  0xb7   :  { %365 = vmatpush.bf16.msra.mxu3 %v275_v40 }
  0xb9   :  { %389 = vmatpush.bf16.msrb.mxu1 %v289_v26 }
  0xbb   :  { %v122_v20 = vpop.permute.xlu1 %121  ;;  %v173_v41 = vpop.permute.xlu0 %172  ;;  %366 = vmatpush.bf16.msra.mxu3 %v269_v9  ;;  %v399_v9 = vld [vmem:[%s1887_s5] sm:$0xff] }
  0xbc   :  { %v179_v42 = vsel %vm174_vm4, %v1455_v36, %v173_v41  ;;  %v187_v27 = vsel %vm174_vm4, %v173_v41, %v999_v54  ;;  %v127_v11 = vsel %vm123_vm5, %v120_v56, %v122_v20  ;;  %v128_v23 = vsel %vm123_vm5, %v122_v20, %v1009_v10  ;;  %474 = vperm.xlu1 %1056, %v399_v9  }
  0xbd   :  { %v282_v30 = vpack.c.bf16 %v179_v42, %v1312_v6  ;;  %v283_v44 = vpack.c.bf16 %v187_v27, %v1314_v7  ;;  %v153_v54 = vsel %vm149_vm6, %v146_v35, %v148_v43  ;;  %v277_v36 = vpack.c.bf16 %v154_v48, %v128_v23 }
  0xbe   :  { %941 = vmatmul.msk.bf16.vlgmr.msra.gmra.mxu3 %vm297_vm9, %v1492_v59  ;;  %v276_v6 = vpack.c.bf16 %v153_v54, %v127_v11  ;;  %v1569_v56 = vperm.slane %v51_v12, 2 }
  0xbf   :  { %377 = vmatpush.bf16.msrb.mxu0 %v282_v30  ;;  %390 = vmatpush.bf16.msrb.mxu1 %v283_v44 }
  0xc3   :  { %v96_v7 = vpop.permute.xlu1 %95  ;;  %v70_v45 = vpop.permute.xlu0 %69  ;;  %378 = vmatpush.bf16.msrb.mxu0 %v276_v6  ;;  %391 = vmatpush.bf16.msrb.mxu1 %v277_v36  ;;  %v398_v36 = vld [vmem:[%s1886_s4] sm:$0xff] }
  0xc4   :  { %v101_v8 = vsel %vm97_vm8, %v94_v33, %v96_v7  ;;  %v102_v10 = vsel %vm97_vm8, %v96_v7, %v1044_v19  ;;  %v75_v24 = vsel %vm71_vm7, %v68_v34, %v70_v45  ;;  %v76_v5 = vsel %vm71_vm7, %v70_v45, %v1039_v50 }
  0xc5   :  { %v270_v4 = vpack.c.bf16 %v101_v8, %v75_v24  ;;  %v271_v49 = vpack.c.bf16 %v102_v10, %v76_v5 }
  0xc7   :  { %379 = vmatpush.bf16.msrb.mxu0 %v270_v4  ;;  %392 = vmatpush.bf16.msrb.mxu1 %v271_v49 }
  0xca   :  { %942 = vmatmul.msk.bf16.vlgmr.msrb.gmra.mxu0 %vm297_vm9, %v1492_v59  ;;  %943 = vmatmul.msk.bf16.vlgmr.msrb.gmra.mxu1 %vm297_vm9, %v1492_v59 }
 0x129   :  { %v1552_v37 = vpop.f32.mrf.mxu0 }
 0x12a   :  { %v413_v53 = vmul.f32 %v1561_v51, %v1552_v37 }
 0x12c   :  { %v426_v59 = vmul.f32 %v413_v53, %v413_v53 }
 0x12e   :  { %v475_v10 = vpop.permute.xlu1 %474 }
 0x131   :  { %v1554_v46 = vpop.f32.mrf.mxu1  ;;  %v331_v19 = vpop.f32.mrf.mxu0 }
 0x132   :  { %v414_v55 = vmul.f32 %v1563_v52, %v1554_v46 }
 0x134   :  { %v427_v60 = vmul.f32 %v414_v55, %v414_v55  ;;  %v419_v62 = vadd.f32 %v414_v55, %v413_v53 }
 0x136   :  { %v432_v3 = vadd.f32 %v427_v60, %v426_v59 }
 0x138   :  { %v1559_v50 = vpop.f32.mrf.mxu2 }
 0x139   :  { %v344_v1 = vpop.f32.mrf.mxu1  ;;  %v415_v61 = vmul.f32 %v1569_v56, %v1559_v50 }
 0x13b   :  { %v428_v2 = vmul.f32 %v415_v61, %v415_v61  ;;  %v420_v17 = vadd.f32 %v419_v62, %v415_v61 }
 0x13d   :  { %v433_v16 = vadd.f32 %v432_v3, %v428_v2 }
 0x140   :  { %v357_v58 = vpop.f32.mrf.mxu2 }
 0x141   :  { %v1575_v47 = vpop.f32.mrf.mxu3 }
 0x142   :  { %v416_v63 = vmul.f32 %v1571_v57, %v1575_v47 }
 0x144   :  { %v429_v18 = vmul.f32 %v416_v63, %v416_v63  ;;  %v421_v25 = vadd.f32 %v420_v17, %v416_v63 }
 0x146   :  { %v434_v38 = vadd.f32 %v433_v16, %v429_v18 }
 0x147   :  { %v381_v21 = vpop.f32.mrf.mxu0  ;;  %v394_v14 = vpop.f32.mrf.mxu1 }
 0x148   :  { %v417_v28 = vmul.f32 %v1579_v0, %v381_v21  ;;  %v418_v31 = vmul.f32 %v1581_v15, %v394_v14 }
 0x149   :  { %v370_v32 = vpop.f32.mrf.mxu3 }
 0x14a   :  { %v430_v33 = vmul.f32 %v417_v28, %v417_v28  ;;  %v422_v34 = vadd.f32 %v421_v25, %v417_v28  ;;  %v431_v35 = vmul.f32 %v418_v31, %v418_v31 }
 0x14c   :  { %v423_v39 = vadd.f32 %v422_v34, %v418_v31  ;;  %v435_v26 = vadd.f32 %v434_v38, %v430_v33 }
 0x14e   :  { %424 = vadd.xlane.f32.xlu2 %v423_v39  ;;  %v436_v29 = vadd.f32 %v435_v26, %v431_v35 }
 0x14f   :  { %v383_v40 = vpop.f32.mrf.mxu0  ;;  %v396_v13 = vpop.f32.mrf.mxu1 }
 0x150   :  { %437 = vadd.xlane.f32.xlu0 %v436_v29 }
 0x1c1   :  { %v425_v20 = vpop.xlane.xlu2 %424 }
 0x1c2   :  { %v439_v41 = vmul.f32 0.001953125, %v425_v20 }
 0x1c3   :  { %v438_v42 = vpop.xlane.xlu0 %437 }
 0x1c4   :  { %v440_v27 = vmul.f32 0.001953125, %v438_v42  ;;  %v441_v43 = vmul.f32 %v439_v41, %v439_v41  ;;  %v455_v24 = vsub.f32 %v1552_v37, %v439_v41  ;;  %v456_v5 = vsub.f32 %v1554_v46, %v439_v41 }
 0x1c5   :  { %v457_v4 = vsub.f32 %v1559_v50, %v439_v41  ;;  %v459_v49 = vsub.f32 %v381_v21, %v439_v41  ;;  %v460_v19 = vsub.f32 %v394_v14, %v439_v41  ;;  %v458_v46 = vsub.f32 %v1575_v47, %v439_v41 }
 0x1c6   :  { %v442_v30 = vsub.f32 %v440_v27, %v441_v43 }
 0x1c8   :  { %v443_v44 = vadd.f32 1e-05, %v442_v30 }
 0x1ca   :  { %1173 = vrsqrt.f32 %v443_v44  ;;  %vm450_vm11 = vweird.f32 %v443_v44 }
 0x1d0   :  { %v1174_v11 = vpop.eup %1173 }
 0x1d1   :  { %v445_v23 = vmul.f32 %v1174_v11, %v443_v44  ;;  %vm451_vm10 = vweird.f32 %v1174_v11 }
 0x1d2   :  { %vm452_vm12 = vmor %vm450_vm11, %vm451_vm10 }
 0x1d3   :  { %v446_v48 = vmul.f32 %v1174_v11, %v445_v23 }
 0x1d5   :  { %v447_v54 = vmul.f32 0.5, %v446_v48 }
 0x1d7   :  { %v448_v6 = vsub.f32 1.5, %v447_v54 }
 0x1d9   :  { %v449_v7 = vmul.f32 %v1174_v11, %v448_v6 }
 0x1db   :  { %v453_v45 = vsel %vm452_vm12, %v1174_v11, %v449_v7 }
 0x1dc   :  { %v454_v8 = vmul.f32 %v453_v45, %v398_v36 }
 0x1de   :  { %463 = vperm.xlu1 %1056, %v454_v8  }
 0x250   :  { %v464_v12 = vpop.permute.xlu1 %463 }
 0x251   :  { %v466_v1 = vmul.f32 %v464_v12, %v455_v24  ;;  %v467_v53 = vmul.f32 %v464_v12, %v456_v5  ;;  %v468_v55 = vmul.f32 %v464_v12, %v457_v4  ;;  %v470_v58 = vmul.f32 %v464_v12, %v459_v49 }
 0x252   :  { %v471_v59 = vmul.f32 %v464_v12, %v460_v19  ;;  %v469_v25 = vmul.f32 %v464_v12, %v458_v46 }
 0x253   :  { %v477_v60 = vadd.f32 %v475_v10, %v466_v1  ;;  %v478_v61 = vadd.f32 %v475_v10, %v467_v53  ;;  %v479_v62 = vadd.f32 %v475_v10, %v468_v55  ;;  %v481_v63 = vadd.f32 %v475_v10, %v470_v58 }
 0x254   :  { %v482_v3 = vadd.f32 %v475_v10, %v471_v59  ;;  %v480_v32 = vadd.f32 %v475_v10, %v469_v25 }
 0x255   :  { %v483_v2 = vmax.f32 %v477_v60, 0.0  ;;  %v484_v17 = vmax.f32 %v478_v61, 0.0  ;;  %v485_v37 = vmax.f32 %v479_v62, 0.0  ;;  %v487_v18 = vmax.f32 %v481_v63, 0.0 }
 0x256   :  { %v488_v28 = vmax.f32 %v482_v3, 0.0  ;;  %v486_v34 = vmax.f32 %v480_v32, 0.0 }
 0x257   :  { %v1596_v50 = vmul.f32 %v483_v2, %v1561_v51  ;;  %v1599_v21 = vmul.f32 %v484_v17, %v1563_v52  ;;  %v1602_v14 = vmul.f32 %v485_v37, %v1569_v56  ;;  %v1605_v16 = vmul.f32 %v487_v18, %v1579_v0 }
 0x258   :  { %v1615_v33 = vmul.f32 %v488_v28, %v1581_v15  ;;  %v1623_v38 = vmul.f32 %v486_v34, %v1571_v57 }
 0x259   :  { %v1072_v31 = vpack.i.bf16 %v1599_v21, %v1596_v50  ;;  %v1082_v47 = vpack.i.bf16 %v1605_v16, %v1602_v14  ;;  %v1152_v29 = vpack.i.bf16 %v1602_v14, %v1605_v16 }
 0x25a   :  { %v1097_v35 = vpack.i.bf16 %v1596_v50, %v1615_v33  ;;  %v1112_v39 = vpack.i.bf16 %v1623_v38, %v1599_v21  ;;  %v1117_v26 = vpack.i.bf16 %v1623_v38, %v1615_v33  ;;  %v1167_v40 = vpack.i.bf16 %v1605_v16, %v1623_v38 }
 0x25b   :  { %1073 = vrot.lane.b32.xlu2 %v1072_v31, %s1238_s11  ;;  %1058 = vrot.lane.b32.xlu1 %v1072_v31, %s1237_s10 }
 0x25c   :  { %1083 = vrot.lane.b32.xlu0 %v1082_v47, %s1238_s11 }
 0x263   :  { %1098 = vrot.lane.b32.xlu2 %v1097_v35, %s1241_s14  ;;  %1063 = vrot.lane.b32.xlu1 %v1082_v47, %s1237_s10 }
 0x264   :  { %1103 = vrot.lane.b32.xlu0 %v1097_v35, %s1240_s13 }
 0x26b   :  { %1113 = vrot.lane.b32.xlu2 %v1112_v39, %s1240_s13  ;;  %1068 = vrot.lane.b32.xlu1 %v1072_v31, %s1236_s0 }
 0x26c   :  { %1118 = vrot.lane.b32.xlu0 %v1117_v26, %s1237_s10 }
 0x273   :  { %1128 = vrot.lane.b32.xlu2 %v1097_v35, %s1242_s15  ;;  %1078 = vrot.lane.b32.xlu1 %v1082_v47, %s1236_s0 }
 0x274   :  { %1133 = vrot.lane.b32.xlu0 %v1112_v39, %s1243_s16 }
 0x27b   :  { %1138 = vrot.lane.b32.xlu2 %v1117_v26, %s1236_s0  ;;  %1088 = vrot.lane.b32.xlu1 %v1072_v31, %s1239_s12 }
 0x27c   :  { %1143 = vrot.lane.b32.xlu0 %v1117_v26, %s1238_s11 }
 0x283   :  { %1153 = vrot.lane.b32.xlu2 %v1152_v29, %s1241_s14  ;;  %1093 = vrot.lane.b32.xlu1 %v1082_v47, %s1239_s12 }
 0x284   :  { %1158 = vrot.lane.b32.xlu0 %v1152_v29, %s1240_s13 }
 0x28b   :  { %1168 = vrot.lane.b32.xlu2 %v1167_v40, %s1242_s15  ;;  %1108 = vrot.lane.b32.xlu1 %v1112_v39, %s1241_s14 }
 0x28c   :  { %533 = vrot.lane.b32.xlu0 %v1602_v14, %s1242_s15 }
 0x293   :  { %1123 = vrot.lane.b32.xlu1 %v1097_v35, %s1243_s16 }
 0x29b   :  { %531 = vrot.lane.b32.xlu1 %v1599_v21, %s1242_s15 }
 0x2a3   :  { %1148 = vrot.lane.b32.xlu1 %v1117_v26, %s1239_s12 }
 0x2ab   :  { %1163 = vrot.lane.b32.xlu1 %v1152_v29, %s1243_s16 }
 0x2b5   :  { %v1654_v13 = vpop.permute.xlu2 %1073 }
 0x2b6   :  { %v1076_v7 = vunpack.i.h.bf16 %v1654_v13  ;;  %v1075_v45 = vunpack.i.l.bf16 %v1654_v13 }
 0x2b8   :  { %v663_v1 = vsel %vm226_vm3, %v1075_v45, %v1076_v7 }
 0x2bd   :  { %v1656_v22 = vpop.permute.xlu2 %1098 }
 0x2c5   :  { %v1670_v11 = vpop.permute.xlu2 %1113 }
 0x2cd   :  { %v1658_v9 = vpop.permute.xlu1 %1058  ;;  %v1687_v19 = vpop.permute.xlu2 %1128 }
 0x2ce   :  { %v1660_v20 = vpop.permute.xlu0 %1083  ;;  %v1061_v41 = vunpack.i.h.bf16 %v1658_v9  ;;  %v1060_v42 = vunpack.i.l.bf16 %v1658_v9 }
 0x2cf   :  { %v1085_v61 = vunpack.i.l.bf16 %v1660_v20  ;;  %v1086_v29 = vunpack.i.h.bf16 %v1660_v20 }
 0x2d0   :  { %v688_v27 = vsel %vm252_vm0, %v1060_v42, %v1061_v41 }
 0x2d1   :  { %v725_v43 = vpack.c.bf16 %v688_v27, %v688_v27  ;;  %v664_v18 = vsel %vm226_vm3, %v1076_v7, %v1085_v61  ;;  %v1100_v27 = vunpack.i.l.bf16 %v1656_v22 }
 0x2d3   :  { %v736_v30 = vsel %vm301_vm1, %v725_v43, 0 }
 0x2d4   :  { %756 = vmatpush.bf16.msrb.mxu2 %v736_v30 }
 0x2d5   :  { %v1668_v44 = vpop.permute.xlu1 %1063  ;;  %v1709_v25 = vpop.permute.xlu2 %1138 }
 0x2d6   :  { %v1672_v23 = vpop.permute.xlu0 %1103  ;;  %v1065_v48 = vunpack.i.l.bf16 %v1668_v44  ;;  %v1066_v4 = vunpack.i.h.bf16 %v1668_v44  ;;  %v1141_v28 = vunpack.i.h.bf16 %v1709_v25 }
 0x2d7   :  { %v1106_v32 = vunpack.i.h.bf16 %v1672_v23  ;;  %v1105_v34 = vunpack.i.l.bf16 %v1672_v23 }
 0x2d8   :  { %v689_v54 = vsel %vm252_vm0, %v1061_v41, %v1065_v48  ;;  %v1101_v41 = vunpack.i.h.bf16 %v1656_v22 }
 0x2d9   :  { %v726_v6 = vpack.c.bf16 %v689_v54, %v689_v54 }
 0x2db   :  { %v739_v36 = vsel %vm301_vm1, %v726_v6, 0 }
 0x2dc   :  { %769 = vmatpush.bf16.msrb.mxu3 %v739_v36 }
 0x2dd   :  { %v1679_v8 = vpop.permute.xlu1 %1068 }
 0x2de   :  { %v1681_v10 = vpop.permute.xlu0 %1118  ;;  %v1071_v24 = vunpack.i.h.bf16 %v1679_v8  ;;  %v1070_v5 = vunpack.i.l.bf16 %v1679_v8 }
 0x2df   :  { %v1121_v49 = vunpack.i.h.bf16 %v1681_v10 }
 0x2e0   :  { %v638_v12 = vsel %vm200_vm2, %v1070_v5, %v1071_v24 }
 0x2e1   :  { %v719_v53 = vpack.c.bf16 %v663_v1, %v638_v12  ;;  %v690_v55 = vsel %vm252_vm0, %v1065_v48, %v1121_v49  ;;  %v691_v58 = vsel %vm252_vm0, %v1121_v49, %v1066_v4  ;;  %v575_v49 = vsel %vm123_vm5, %v1100_v27, %v1101_v41 }
 0x2e2   :  { %v727_v59 = vpack.c.bf16 %v690_v55, %v690_v55  ;;  %v728_v60 = vpack.c.bf16 %v691_v58, %v691_v58 }
 0x2e3   :  { %757 = vmatpush.bf16.msrb.mxu2 %v719_v53 }
 0x2e4   :  { %v742_v62 = vsel %vm301_vm1, %v727_v59, 0  ;;  %v745_v63 = vsel %vm301_vm1, %v728_v60, 0  ;;  %v1115_v59 = vunpack.i.l.bf16 %v1670_v11 }
 0x2e5   :  { %782 = vmatpush.bf16.msra.mxu0 %v742_v62  ;;  %795 = vmatpush.bf16.msra.mxu1 %v745_v63  ;;  %v1702_v3 = vpop.permute.xlu1 %1078 }
 0x2e6   :  { %v1704_v2 = vpop.permute.xlu0 %1133  ;;  %v1080_v17 = vunpack.i.l.bf16 %v1702_v3  ;;  %v1081_v31 = vunpack.i.h.bf16 %v1702_v3  ;;  %v589_v63 = vsel %vm149_vm6, %v1106_v32, %v1115_v59 }
 0x2e8   :  { %v639_v37 = vsel %vm200_vm2, %v1071_v24, %v1080_v17  ;;  %v640_v30 = vsel %vm200_vm2, %v1080_v17, %v1141_v28  ;;  %v641_v6 = vsel %vm200_vm2, %v1141_v28, %v1081_v31  ;;  %v600_v24 = vsel %vm149_vm6, %v1105_v34, %v1106_v32 }
 0x2e9   :  { %v720_v46 = vpack.c.bf16 %v664_v18, %v639_v37  ;;  %v707_v12 = vpack.c.bf16 %v600_v24, %v575_v49  ;;  %v1130_v17 = vunpack.i.l.bf16 %v1687_v19 }
 0x2eb   :  { %770 = vmatpush.bf16.msrb.mxu3 %v720_v46 }
 0x2ed   :  { %v1713_v47 = vpop.permute.xlu1 %1088 }
 0x2ee   :  { %v1717_v35 = vpop.permute.xlu0 %1143  ;;  %v1091_v39 = vunpack.i.h.bf16 %v1713_v47  ;;  %v1090_v26 = vunpack.i.l.bf16 %v1713_v47 }
 0x2ef   :  { %v1146_v40 = vunpack.i.h.bf16 %v1717_v35  ;;  %v1145_v28 = vunpack.i.l.bf16 %v1717_v35 }
 0x2f0   :  { %v613_v43 = vsel %vm174_vm4, %v1090_v26, %v1091_v39 }
 0x2f1   :  { %v713_v48 = vpack.c.bf16 %v613_v43, %v1596_v50  ;;  %v665_v54 = vsel %vm226_vm3, %v1085_v61, %v1146_v40  ;;  %v666_v20 = vsel %vm226_vm3, %v1146_v40, %v1086_v29  ;;  %v1120_v61 = vunpack.i.l.bf16 %v1681_v10 }
 0x2f2   :  { %v721_v36 = vpack.c.bf16 %v665_v54, %v640_v30  ;;  %v722_v7 = vpack.c.bf16 %v666_v20, %v641_v6  ;;  %v1140_v43 = vunpack.i.l.bf16 %v1709_v25  ;;  %v1781_v30 = vld [vmem:[%s1885_s3] sm:$0xf]  ;;  %v1135_v54 = vunpack.i.l.bf16 %v1704_v2 }
 0x2f3   :  { %758 = vmatpush.bf16.msrb.mxu2 %v713_v48  ;;  %v692_v37 = vsel %vm252_vm0, %v1066_v4, %v1120_v61  ;;  %v700_v4 = vsel %vm252_vm0, %v1120_v61, %v1060_v42  ;;  %v667_v48 = vsel %vm226_vm3, %v1086_v29, %v1145_v28 }
 0x2f4   :  { %783 = vmatpush.bf16.msra.mxu0 %v721_v36  ;;  %796 = vmatpush.bf16.msra.mxu1 %v722_v7  ;;  %v642_v9 = vsel %vm200_vm2, %v1081_v31, %v1140_v43  ;;  %v730_v42 = vpack.c.bf16 %v700_v4, %v700_v4  ;;  %v675_v31 = vsel %vm226_vm3, %v1145_v28, %v1075_v45 }
 0x2f5   :  { %v1739_v50 = vpop.permute.xlu1 %1093  ;;  %v723_v20 = vpack.c.bf16 %v667_v48, %v642_v9  ;;  %v650_v49 = vsel %vm200_vm2, %v1140_v43, %v1070_v5 }
 0x2f6   :  { %v1095_v1 = vunpack.i.l.bf16 %v1739_v50  ;;  %v751_v7 = vsel %vm301_vm1, %v730_v42, 0  ;;  %v1159_v24 = vpop.permute.xlu0 %1158 }
 0x2f7   :  { %759 = vmatpush.bf16.msrb.mxu2 %v707_v12  ;;  %v1161_v8 = vunpack.i.h.bf16 %v1159_v24 }
 0x2f8   :  { %v614_v53 = vsel %vm174_vm4, %v1091_v39, %v1095_v1  ;;  %v729_v39 = vpack.c.bf16 %v692_v37, %v692_v37 }
 0x2f9   :  { %v714_v55 = vpack.c.bf16 %v614_v53, %v1599_v21  ;;  %v1131_v21 = vunpack.i.h.bf16 %v1687_v19  ;;  %v724_v53 = vpack.c.bf16 %v675_v31, %v650_v49 }
 0x2fa   :  { %v748_v35 = vsel %vm301_vm1, %v729_v39, 0 }
 0x2fb   :  { %771 = vmatpush.bf16.msrb.mxu3 %v714_v55  ;;  %v550_v40 = vsel %vm97_vm8, %v1130_v17, %v1131_v21 }
 0x2fd   :  { %v1746_v58 = vpop.permute.xlu1 %1108 }
 0x2fe   :  { %v1110_v60 = vunpack.i.l.bf16 %v1746_v58  ;;  %v1111_v13 = vunpack.i.h.bf16 %v1746_v58 }
 0x300   :  { %v564_v62 = vsel %vm123_vm5, %v1101_v41, %v1110_v60  ;;  %v1154_v41 = vpop.permute.xlu2 %1153 }
 0x301   :  { %v708_v3 = vpack.c.bf16 %v589_v63, %v564_v62  ;;  %v1156_v55 = vunpack.i.h.bf16 %v1154_v41  ;;  %v1155_v61 = vunpack.i.l.bf16 %v1154_v41  ;;  %v1096_v63 = vunpack.i.h.bf16 %v1739_v50 }
 0x302   :  { %v1116_v50 = vunpack.i.h.bf16 %v1670_v11 }
 0x303   :  { %772 = vmatpush.bf16.msrb.mxu3 %v708_v3  ;;  %v566_v43 = vsel %vm123_vm5, %v1156_v55, %v1111_v13  ;;  %v567_v47 = vsel %vm123_vm5, %v1111_v13, %v1155_v61  ;;  %v568_v58 = vsel %vm123_vm5, %v1155_v61, %v1100_v27 }
 0x305   :  { %v1762_v18 = vpop.permute.xlu1 %1123 }
 0x306   :  { %v1126_v10 = vunpack.i.h.bf16 %v1762_v18  ;;  %v1125_v46 = vunpack.i.l.bf16 %v1762_v18 }
 0x308   :  { %v525_v32 = vsel %vm71_vm7, %v1125_v46, %v1126_v10  ;;  %v514_v36 = vsel %vm71_vm7, %v1126_v10, %v1135_v54  ;;  %v1169_v12 = vpop.permute.xlu2 %1168  ;;  %v1160_v10 = vunpack.i.l.bf16 %v1159_v24 }
 0x309   :  { %v701_v44 = vpack.c.bf16 %v550_v40, %v525_v32  ;;  %v1170_v37 = vunpack.i.l.bf16 %v1169_v12 }
 0x30b   :  { %760 = vmatpush.bf16.msrb.mxu2 %v701_v44 }
 0x30d   :  { %v1785_v6 = vpop.permute.xlu1 %531 }
 0x30e   :  { %v539_v25 = vsel %vm97_vm8, %v1131_v21, %v1785_v6  ;;  %944 = vmatmul.msk.bf16.vlgmr.msrb.gmra.mxu2 %vm297_vm9, %v1781_v30  ;;  %v1171_v21 = vunpack.i.h.bf16 %v1169_v12 }
 0x30f   :  { %808 = vmatpush.bf16.msra.mxu2 %v748_v35  ;;  %v702_v29 = vpack.c.bf16 %v539_v25, %v514_v36 }
 0x310   :  { %v542_v48 = vsel %vm97_vm8, %v1170_v37, %v1171_v21  ;;  %v543_v22 = vsel %vm97_vm8, %v1171_v21, %v1130_v17 }
 0x311   :  { %773 = vmatpush.bf16.msrb.mxu3 %v702_v29 }
 0x313   :  { %809 = vmatpush.bf16.msra.mxu2 %v723_v20 }
 0x314   :  { %945 = vmatmul.msk.bf16.vlgmr.msrb.gmra.mxu3 %vm297_vm9, %v1781_v30 }
 0x315   :  { %821 = vmatpush.bf16.msra.mxu3 %v751_v7  ;;  %v1149_v62 = vpop.permute.xlu1 %1148 }
 0x316   :  { %v1151_v3 = vunpack.i.h.bf16 %v1149_v62  ;;  %v1150_v45 = vunpack.i.l.bf16 %v1149_v62 }
 0x318   :  { %v615_v5 = vsel %vm174_vm4, %v1095_v1, %v1151_v3  ;;  %v616_v28 = vsel %vm174_vm4, %v1151_v3, %v1096_v63  ;;  %v617_v39 = vsel %vm174_vm4, %v1096_v63, %v1150_v45  ;;  %v625_v32 = vsel %vm174_vm4, %v1150_v45, %v1090_v26 }
 0x319   :  { %822 = vmatpush.bf16.msra.mxu3 %v724_v53  ;;  %v715_v40 = vpack.c.bf16 %v615_v5, %v1602_v14  ;;  %v716_v44 = vpack.c.bf16 %v616_v28, %v1623_v38  ;;  %v717_v41 = vpack.c.bf16 %v617_v39, %v1605_v16  ;;  %v718_v4 = vpack.c.bf16 %v625_v32, %v1615_v33  ;;  %v534_v38 = vpop.permute.xlu0 %533 }
 0x31a   :  { %v565_v1 = vsel %vm123_vm5, %v1110_v60, %v1156_v55  ;;  %v593_v14 = vsel %vm149_vm6, %v1160_v10, %v1105_v34  ;;  %v1136_v16 = vunpack.i.h.bf16 %v1704_v2  ;;  %v590_v33 = vsel %vm149_vm6, %v1115_v59, %v1161_v8 }
 0x31b   :  { %784 = vmatpush.bf16.msra.mxu0 %v715_v40  ;;  %797 = vmatpush.bf16.msra.mxu1 %v716_v44  ;;  %v591_v26 = vsel %vm149_vm6, %v1161_v8, %v1116_v50  ;;  %v709_v35 = vpack.c.bf16 %v590_v33, %v565_v1  ;;  %v592_v34 = vsel %vm149_vm6, %v1116_v50, %v1160_v10 }
 0x31c   :  { %810 = vmatpush.bf16.msra.mxu2 %v717_v41  ;;  %v710_v23 = vpack.c.bf16 %v591_v26, %v566_v43  ;;  %v711_v25 = vpack.c.bf16 %v592_v34, %v567_v47  ;;  %v712_v20 = vpack.c.bf16 %v593_v14, %v568_v58  ;;  %v541_v11 = vsel %vm97_vm8, %v534_v38, %v1170_v37 }
 0x31d   :  { %823 = vmatpush.bf16.msra.mxu3 %v718_v4  ;;  %v1164_v60 = vpop.permute.xlu1 %1163  ;;  %v540_v59 = vsel %vm97_vm8, %v1785_v6, %v534_v38 }
 0x31e   :  { %v1166_v9 = vunpack.i.h.bf16 %v1164_v60  ;;  %v1165_v42 = vunpack.i.l.bf16 %v1164_v60 }
 0x31f   :  { %785 = vmatpush.bf16.msra.mxu0 %v709_v35  ;;  %798 = vmatpush.bf16.msra.mxu1 %v710_v23  ;;  %v831_v23 = vld [vmem:[%s1888_s6] sm:$0xff]  ;;  %s1245_s6 = smov [#allocation5]  }
 0x320   :  { %811 = vmatpush.bf16.msra.mxu2 %v711_v25  ;;  %v515_v27 = vsel %vm71_vm7, %v1135_v54, %v1166_v9  ;;  %v516_v36 = vsel %vm71_vm7, %v1166_v9, %v1136_v16  ;;  %v517_v29 = vsel %vm71_vm7, %v1136_v16, %v1165_v42  ;;  %v518_v6 = vsel %vm71_vm7, %v1165_v42, %v1125_v46  ;;  %v832_v42 = vld [vmem:[%s1889_s7] sm:$0xff]  ;;  %s926_s7 = sshll.u32 %s1245_s6, 4  ;;  %s927_s7 = int_to_ptr.vmem [resolvable:$true] %s926_s7 }
 0x321   :  { %824 = vmatpush.bf16.msra.mxu3 %v712_v20  ;;  %v703_v7 = vpack.c.bf16 %v540_v59, %v515_v27  ;;  %v704_v31 = vpack.c.bf16 %v541_v11, %v516_v36  ;;  %v705_v24 = vpack.c.bf16 %v542_v48, %v517_v29  ;;  %v706_v19 = vpack.c.bf16 %v543_v22, %v518_v6 }
 0x323   :  { %786 = vmatpush.bf16.msra.mxu0 %v703_v7  ;;  %799 = vmatpush.bf16.msra.mxu1 %v704_v31 }
 0x324   :  { %812 = vmatpush.bf16.msra.mxu2 %v705_v24 }
 0x325   :  { %825 = vmatpush.bf16.msra.mxu3 %v706_v19 }
 0x326   :  { %946 = vmatmul.msk.bf16.vlgmr.msra.gmra.mxu0 %vm297_vm9, %v1781_v30  ;;  %947 = vmatmul.msk.bf16.vlgmr.msra.gmra.mxu1 %vm297_vm9, %v1781_v30 }
 0x327   :  { %948 = vmatmul.msk.bf16.vlgmr.msra.gmra.mxu2 %vm297_vm9, %v1781_v30 }
 0x328   :  { %949 = vmatmul.msk.bf16.vlgmr.msra.gmra.mxu3 %vm297_vm9, %v1781_v30 }
 0x391   :  { %v1859_v2 = vpop.f32.mrf.mxu2 }
 0x392   :  { %v833_v46 = vmul.f32 %v1859_v2, %v1561_v51 }
 0x394   :  { %v846_v12 = vmul.f32 %v833_v46, %v833_v46 }
 0x397   :  { %v1861_v17 = vpop.f32.mrf.mxu3 }
 0x398   :  { %v834_v54 = vmul.f32 %v1861_v17, %v1563_v52 }
 0x399   :  { %v764_v18 = vpop.f32.mrf.mxu2 }
 0x39a   :  { %v847_v53 = vmul.f32 %v834_v54, %v834_v54  ;;  %v839_v63 = vadd.f32 %v834_v54, %v833_v46 }
 0x39c   :  { %v852_v3 = vadd.f32 %v847_v53, %v846_v12 }
 0x39f   :  { %v777_v49 = vpop.f32.mrf.mxu3 }
 0x3a3   :  { %v788_v55 = vpop.f32.mrf.mxu0  ;;  %v801_v61 = vpop.f32.mrf.mxu1 }
 0x3a4   :  { %v835_v62 = vmul.f32 %v788_v55, %v1569_v56  ;;  %v836_v30 = vmul.f32 %v801_v61, %v1571_v57 }
 0x3a6   :  { %v848_v13 = vmul.f32 %v835_v62, %v835_v62  ;;  %v840_v45 = vadd.f32 %v839_v63, %v835_v62  ;;  %v849_v37 = vmul.f32 %v836_v30, %v836_v30 }
 0x3a8   :  { %v853_v21 = vadd.f32 %v852_v3, %v848_v13  ;;  %v841_v10 = vadd.f32 %v840_v45, %v836_v30  ;;  %v1180_v13 = vld [vmem:[#allocation2 + $0x18] sm:$0xff]  ;;  %v1181_v45 = vld [vmem:[#allocation2 + $0x20] sm:$0xff] }
 0x3aa   :  { %v814_v8 = vpop.f32.mrf.mxu2  ;;  %v854_v44 = vadd.f32 %v853_v21, %v849_v37  ;;  %v1182_v37 = vld [vmem:[#allocation2 + $0x28] sm:$0xff] }
 0x3ab   :  { %v827_v51 = vpop.f32.mrf.mxu3  ;;  %v837_v52 = vmul.f32 %v814_v8, %v1579_v0  ;;  %v790_v28 = vpop.f32.mrf.mxu0 }
 0x3ac   :  { %v838_v5 = vmul.f32 %v827_v51, %v1581_v15  ;;  %v803_v39 = vpop.f32.mrf.mxu1 }
 0x3ad   :  { %v850_v32 = vmul.f32 %v837_v52, %v837_v52  ;;  %v842_v40 = vadd.f32 %v841_v10, %v837_v52 }
 0x3ae   :  { %v851_v56 = vmul.f32 %v838_v5, %v838_v5 }
 0x3af   :  { %v843_v41 = vadd.f32 %v842_v40, %v838_v5  ;;  %v855_v57 = vadd.f32 %v854_v44, %v850_v32 }
 0x3b1   :  { %844 = vadd.xlane.f32.xlu1 %v843_v41  ;;  %v856_v4 = vadd.f32 %v855_v57, %v851_v56 }
 0x3b2   :  { %v816_v50 = vpop.f32.mrf.mxu2 }
 0x3b3   :  { %v829_v1 = vpop.f32.mrf.mxu3  ;;  %857 = vadd.xlane.f32.xlu2 %v856_v4 }
 0x424   :  { %v845_v43 = vpop.xlane.xlu1 %844 }
 0x425   :  { %v859_v47 = vmul.f32 0.001953125, %v845_v43 }
 0x426   :  { %v858_v14 = vpop.xlane.xlu2 %857 }
 0x427   :  { %v860_v16 = vmul.f32 0.001953125, %v858_v14  ;;  %v861_v0 = vmul.f32 %v859_v47, %v859_v47  ;;  %v875_v20 = vsub.f32 %v1859_v2, %v859_v47  ;;  %v876_v11 = vsub.f32 %v1861_v17, %v859_v47  ;;  %v1177_v2 = vld [vmem:[#allocation2] sm:$0xff]  ;;  %v1178_v17 = vld [vmem:[#allocation2 + $0x8] sm:$0xff] }
 0x428   :  { %v877_v59 = vsub.f32 %v788_v55, %v859_v47  ;;  %v878_v22 = vsub.f32 %v801_v61, %v859_v47  ;;  %v879_v27 = vsub.f32 %v814_v8, %v859_v47  ;;  %v880_v36 = vsub.f32 %v827_v51, %v859_v47  ;;  %v1179_v61 = vld [vmem:[#allocation2 + $0x10] sm:$0xff] }
 0x429   :  { %v862_v38 = vsub.f32 %v860_v16, %v861_v0 }
 0x42b   :  { %v863_v15 = vadd.f32 1e-05, %v862_v38 }
 0x42d   :  { %1175 = vrsqrt.f32 %v863_v15  ;;  %vm870_vm14 = vweird.f32 %v863_v15 }
 0x433   :  { %v1176_v33 = vpop.eup %1175 }
 0x434   :  { %v865_v26 = vmul.f32 %v1176_v33, %v863_v15  ;;  %vm871_vm13 = vweird.f32 %v1176_v33 }
 0x435   :  { %vm872_vm15 = vmor %vm870_vm14, %vm871_vm13 }
 0x436   :  { %v866_v58 = vmul.f32 %v1176_v33, %v865_v26 }
 0x438   :  { %v867_v60 = vmul.f32 0.5, %v866_v58 }
 0x43a   :  { %v868_v35 = vsub.f32 1.5, %v867_v60 }
 0x43c   :  { %v869_v34 = vmul.f32 %v1176_v33, %v868_v35 }
 0x43e   :  { %v873_v48 = vsel %vm872_vm15, %v1176_v33, %v869_v34 }
 0x43f   :  { %v874_v9 = vmul.f32 %v873_v48, %v831_v23 }
 0x441   :  { %883 = vperm.xlu0 %1172, %v874_v9  }
 0x449   :  { %894 = vperm.xlu0 %1172, %v832_v42  }
 0x4b3   :  { %v884_v25 = vpop.permute.xlu0 %883 }
 0x4b4   :  { %v886_v29 = vmul.f32 %v884_v25, %v875_v20  ;;  %v887_v7 = vmul.f32 %v884_v25, %v876_v11  ;;  %v888_v31 = vmul.f32 %v884_v25, %v877_v59  ;;  %v889_v24 = vmul.f32 %v884_v25, %v878_v22 }
 0x4b5   :  { %v890_v6 = vmul.f32 %v884_v25, %v879_v27  ;;  %v891_v19 = vmul.f32 %v884_v25, %v880_v36 }
 0x4bb   :  { %v895_v18 = vpop.permute.xlu0 %894 }
 0x4bc   :  { %v897_v46 = vadd.f32 %v895_v18, %v886_v29  ;;  %v898_v54 = vadd.f32 %v895_v18, %v887_v7  ;;  %v899_v49 = vadd.f32 %v895_v18, %v888_v31  ;;  %v900_v12 = vadd.f32 %v895_v18, %v889_v24 }
 0x4bd   :  { %v901_v53 = vadd.f32 %v895_v18, %v890_v6  ;;  %v902_v62 = vadd.f32 %v895_v18, %v891_v19 }
 0x4be   :  { %v903_v63 = vadd.f32 %v1177_v2, %v897_v46  ;;  %v904_v55 = vadd.f32 %v1178_v17, %v898_v54  ;;  %v905_v30 = vadd.f32 %v1179_v61, %v899_v49  ;;  %v906_v3 = vadd.f32 %v1180_v13, %v900_v12 }
 0x4bf   :  { %v907_v21 = vadd.f32 %v1181_v45, %v901_v53  ;;  %v908_v8 = vadd.f32 %v1182_v37, %v902_v62 }
 0x4c0   :  { %v909_v51 = vmax.f32 %v903_v63, 0.0  ;;  %v910_v10 = vmax.f32 %v904_v55, 0.0  ;;  %v911_v52 = vmax.f32 %v905_v30, 0.0  ;;  %v912_v5 = vmax.f32 %v906_v3, 0.0 }
 0x4c1   :  { %v913_v28 = vmax.f32 %v907_v21, 0.0  ;;  %v914_v39 = vmax.f32 %v908_v8, 0.0 }
 0x4c2   :  { %915 = vst [vmem:[#allocation5] sm:$0xff] %v909_v51 }
 0x4c3   :  { %916 = vst [vmem:[#allocation5 + $0x8] sm:$0xff] %v910_v10 }
 0x4c4   :  { %917 = vst [vmem:[#allocation5 + $0x10] sm:$0xff] %v911_v52 }
 0x4c5   :  { %918 = vst [vmem:[#allocation5 + $0x18] sm:$0xff] %v912_v5 }
 0x4c6   :  { %919 = vst [vmem:[#allocation5 + $0x20] sm:$0xff] %v913_v28 }
 0x4c7   :  { %920 = vst [vmem:[#allocation5 + $0x28] sm:$0xff] %v914_v39 }
 0x4c8   :  { %931 = dma.vmem_to_hbm [thread:$0]  %s927_s7, 768, %s929_s28, [#allocation4]  }
 0x4c9   :  { %1233 = dma.done.wait [#allocation4], 768  }
 0x4ca   :  { %1234 = vsyncadd [#allocation4], 4294966528 }
 0x4cb   :  { %936 = vsyncpa [#allocation3], 1 }
 0x4cc   :  { %937 = vsyncpa [#allocation4], 1 }

</bundles_post_ra>
